<compile_context>
chip_gen: v7x
topology: tpu7x:2x2x1
jax: 0.10.0
libtpu: 0.0.40
codegen_flags: <defaults>
</compile_context>

<pallas_src>
import jax
import jax.numpy as jnp
from jax import lax
from jax.experimental import pallas as pl
from jax.experimental.pallas import tpu as pltpu


def _round_up(a: int, m: int) -> int:
    return ((a + m - 1) // m) * m


def _vmem_capacity_bytes() -> int:
    try:
        info = pltpu.get_tpu_info()
        cap = getattr(info, "vmem_capacity_bytes", None)
        if cap:
            return int(cap)
    except Exception:
        pass
    return 64 << 20  # conservative fallback (v7x per-TC VMEM)


# ----------------------------- Pallas kernels -----------------------------

def _make_proj_kernel(compute_dtype):
    """out = (x @ M) + bias, K-tiled with an f32 VMEM accumulator."""

    def kernel(x_ref, m_ref, b_ref, o_ref, acc_ref):
        k = pl.program_id(1)

        @pl.when(k == 0)
        def _init():
            acc_ref[...] = jnp.zeros_like(acc_ref)

        acc_ref[...] += jnp.dot(
            x_ref[...].astype(compute_dtype),
            m_ref[...].astype(compute_dtype),
            preferred_element_type=jnp.float32)

        @pl.when(k == pl.num_programs(1) - 1)
        def _fin():
            o_ref[...] = (acc_ref[...] + b_ref[...]).astype(o_ref.dtype)

    return kernel


def _make_proj_quan_kernel(compute_dtype, tile_n: int, n_valid: int):
    """Projection + fused quantization-error partial sums (training path).

    Padded output columns are exactly 0.0 (weight 0, bias 0), so sum|v|, sum v^2 and the
    nonzero count over the lane-dense nb_pad columns equal those over the nbit columns.
    """

    def kernel(x_ref, m_ref, b_ref, o_ref, part_ref, acc_ref):
        i = pl.program_id(0)
        k = pl.program_id(1)

        @pl.when(k == 0)
        def _init():
            acc_ref[...] = jnp.zeros_like(acc_ref)

        acc_ref[...] += jnp.dot(
            x_ref[...].astype(compute_dtype),
            m_ref[...].astype(compute_dtype),
            preferred_element_type=jnp.float32)

        @pl.when(k == pl.num_programs(1) - 1)
        def _fin():
            proj = acc_ref[...] + b_ref[...]
            o_ref[...] = proj.astype(o_ref.dtype)

            # quan error on the value actually returned to the user (rounded to out dtype)
            v = proj.astype(o_ref.dtype).astype(jnp.float32)
            # cos(v, sign(v)) = sum|v| / (max(||v||,eps) * max(||sign(v)||,eps))
            num = jnp.sum(jnp.abs(v), axis=-1, keepdims=True)                    # (tn,1)
            sq = jnp.sum(v * v, axis=-1, keepdims=True)                          # (tn,1)
            nz = jnp.sum(jnp.where(v != 0.0, 1.0, 0.0), axis=-1, keepdims=True)  # (tn,1)
            cos = (num * lax.rsqrt(jnp.maximum(sq, 1e-16))
                   * lax.rsqrt(jnp.maximum(nz, 1e-16)))

            # mask padded rows (rows >= n_valid); where() keeps NaN/garbage out.
            row = i * tile_n + lax.broadcasted_iota(jnp.int32, (tile_n, 1), 0)
            contrib = jnp.where(row < n_valid, 1.0 - cos, 0.0)
            partial = jnp.sum(contrib)

            r8 = lax.broadcasted_iota(jnp.int32, (8, 128), 0)
            c8 = lax.broadcasted_iota(jnp.int32, (8, 128), 1)
            part_ref[...] = jnp.where((r8 == 0) & (c8 == 0), partial, 0.0)

    return kernel


# ------------------------------ wrapper ------------------------------------

def _pca_project(x, m_pad, bias_pad, *, compute_dtype, out_dtype, with_quan):
    """out = x @ M + bias, tiled over rows (and features if needed).

    Returns the lane-dense padded output (n_pad, nb_pad); if with_quan, also returns the
    per-row-tile partial sums of (1 - cos(v, sign(v))) packed in (g_n*8, 128) blocks.
    """
    N, D = x.shape
    nb_pad = m_pad.shape[1]
    x_is = jnp.dtype(x.dtype).itemsize
    o_is = jnp.dtype(out_dtype).itemsize

    cap = _vmem_capacity_bytes()
    budget = int(0.45 * cap)

    # --- K (feature) tile: keep the folded weight resident unless it's too big
    #     (only relevant for very large flattened D, e.g. v7x's 64 MiB VMEM).
    tk = D
    if 2 * D * nb_pad * 4 > budget // 2 and D % 128 == 0:
        cands = [c for c in range(128, D, 128)
                 if D % c == 0 and 2 * c * nb_pad * 4 <= budget // 4]
        if cands:
            tk = max(cands)
    kt = D // tk

    # --- N (row) tile: double-buffer-aware VMEM model (2 buffers per pipelined operand).
    weight_bytes = (2 * tk * nb_pad * 4        # folded weight (f32, double-buffered)
                    + 2 * 8 * nb_pad * 4       # bias row (sublane-padded)
                    + 2 * 8 * 128 * 4)         # quan partial tile
    per_row = (2 * tk * x_is                   # x tile (double-buffered, HBM dtype)
               + 2 * nb_pad * o_is             # output tile (double-buffered)
               + nb_pad * 4)                   # f32 accumulator scratch
    tn = (budget - weight_bytes) // max(per_row, 1)
    tn = max(16, min(int(tn), 8192))
    if tn >= N:
        tn = N                                  # single row tile: no x padding pass
        n_pad = N
    else:
        tn = max(16, (tn // 16) * 16)           # bf16 sublane packing / MXU cadence
        n_pad = _round_up(N, tn)
    g_n = n_pad // tn

    xp = x
    if n_pad != N:
        xp = jnp.pad(x, ((0, n_pad - N), (0, 0)))

    est = weight_bytes + per_row * tn + (1 << 20)
    vmem_limit = int(min(cap, max(16 << 20, est + (8 << 20))))

    out_shapes = [jax.ShapeDtypeStruct((n_pad, nb_pad), out_dtype)]
    out_specs = [pl.BlockSpec((tn, nb_pad), lambda i, k: (i, 0))]
    if with_quan:
        out_shapes.append(jax.ShapeDtypeStruct((g_n * 8, 128), jnp.float32))
        out_specs.append(pl.BlockSpec((8, 128), lambda i, k: (i, 0)))
        kernel = _make_proj_quan_kernel(compute_dtype, tn, N)
    else:
        kernel = _make_proj_kernel(compute_dtype)

    result = pl.pallas_call(
        kernel,
        out_shape=tuple(out_shapes) if with_quan else out_shapes[0],
        grid=(g_n, kt),
        in_specs=[
            pl.BlockSpec((tn, tk), lambda i, k: (i, k)),      # x (kept in HBM dtype)
            pl.BlockSpec((tk, nb_pad), lambda i, k: (k, 0)),  # folded weight
            pl.BlockSpec((1, nb_pad), lambda i, k: (0, 0)),   # folded bias
        ],
        out_specs=tuple(out_specs) if with_quan else out_specs[0],
        scratch_shapes=[pltpu.VMEM((tn, nb_pad), jnp.float32)],
        compiler_params=pltpu.CompilerParams(
            dimension_semantics=("parallel", "arbitrary"),
            vmem_limit_bytes=vmem_limit,
        ),
        cost_estimate=pl.CostEstimate(
            flops=int(2 * n_pad * D * nb_pad),
            transcendentals=int(2 * n_pad) if with_quan else 0,
            bytes_accessed=int(n_pad * D * x_is + n_pad * nb_pad * o_is
                               + D * nb_pad * 4),
        ),
    )(xp, m_pad, bias_pad)
    return result


# ------------------------ plain-JAX "fit" glue ------------------------------

def pca_fit(x, nbit):
    x = x.astype(jnp.float32)
    n = x.shape[0]
    mean = jnp.mean(x, axis=0)
    xc = x - mean
    _, s, vt = jnp.linalg.svd(xc, full_matrices=False)
    components = vt[:nbit]                              # (nbit, D)
    explained_variance = (s[:nbit] ** 2) / (n - 1)      # (nbit,)
    return mean, components, explained_variance


def whiten_fit_pca(x):
    """whiten_data_points(..., method='pca') fit: returns X_mean, W (D, D)."""
    x = x.reshape(x.shape[0], -1).astype(jnp.float32)
    x_mean = jnp.mean(x, axis=0)
    xc = x - x_mean
    sigma = xc.T @ xc / xc.shape[0]
    u, lam, _ = jnp.linalg.svd(sigma)
    W = jnp.diag(1.0 / jnp.sqrt(lam + 1e-5)) @ u.T
    return x_mean, W


class PCALossPallas:
    """JAX/Pallas port of PCALoss forward semantics (train fit + eval transform)."""

    def __init__(self, nbit, whiten=False, whiten_input=False,
                 compute_dtype=jnp.bfloat16, out_dtype=None):
        self.nbit = nbit
        self.whiten = whiten
        self.whiten_input = whiten_input
        self.compute_dtype = compute_dtype
        # bf16 output halves the padded writeback; f32 compute keeps f32 output.
        self.out_dtype = out_dtype if out_dtype is not None else compute_dtype
        self.built = False
        self.losses = {}
        self.X_mean = None
        self.W = None
        self.mean_ = None
        self.components_ = None
        self.explained_variance_ = None
        self._M_pad = None
        self._bias_pad = None

    def _build_projection(self):
        # Fold whitening + mean-centering + PCA + whiten scale into (M, bias).
        # M stays f32 in HBM (it is tiny); the kernel casts it on-chip.  For very
        # ill-conditioned whiten_input data, pass compute_dtype=jnp.float32.
        c_t = self.components_.T.astype(jnp.float32)                   # (Dw, nbit)
        if self.whiten:
            inv = 1.0 / jnp.sqrt(self.explained_variance_.astype(jnp.float32))
        else:
            inv = jnp.ones((self.nbit,), jnp.float32)
        mean_proj = self.mean_.astype(jnp.float32) @ c_t               # (nbit,)
        if self.whiten_input:
            M0 = self.W.T.astype(jnp.float32) @ c_t                    # (D, nbit)
            bias = -(self.X_mean.astype(jnp.float32) @ M0 + mean_proj) * inv
        else:
            M0 = c_t
            bias = -mean_proj * inv
        M = M0 * inv[None, :]                                          # inv folded in

        D = M.shape[0]
        nb_pad = _round_up(self.nbit, 128)
        # Lane-dense padding; padded cols MUST be exactly 0 (fused quan-error invariant).
        self._M_pad = jnp.zeros((D, nb_pad), jnp.float32).at[:, :self.nbit].set(M)
        self._bias_pad = jnp.zeros((1, nb_pad), jnp.float32).at[:, :self.nbit].set(
            jnp.reshape(bias, (1, self.nbit)))

    def forward_train(self, x):
        """Training-mode forward: fit PCA (glue), fused transform + quan error kernel."""
        assert not self.built, "please switch to eval mode"
        x = jnp.reshape(x, (x.shape[0], -1)).astype(jnp.float32)
        if self.whiten_input:
            self.X_mean, self.W = whiten_fit_pca(x)
            x_fit = (x - self.X_mean) @ self.W.T
        else:
            x_fit = x
        self.mean_, self.components_, self.explained_variance_ = pca_fit(x_fit, self.nbit)
        self._build_projection()

        out_pad, partials = _pca_project(
            x, self._M_pad, self._bias_pad,
            compute_dtype=self.compute_dtype, out_dtype=self.out_dtype, with_quan=True)
        q = jnp.sum(partials) / x.shape[0]
        v_tilde = out_pad[:x.shape[0], :self.nbit]
        self.losses["quan"] = q
        self.built = True
        return v_tilde, q

    def forward_eval(self, x):
        """Eval-mode forward: single fused Pallas projection."""
        assert self.built, "please perform training"
        x = jnp.reshape(x, (x.shape[0], -1))
        out_pad = _pca_project(
            x, self._M_pad, self._bias_pad,
            compute_dtype=self.compute_dtype, out_dtype=self.out_dtype, with_quan=False)
        return out_pad[:x.shape[0], :self.nbit]


# ------------------------------ references ----------------------------------

def ref_eval(x, model):
    x = x.reshape(x.shape[0], -1).astype(jnp.float32)
    if model.whiten_input:
        x = (x - model.X_mean) @ model.W.T
    x = x - model.mean_
    xp = x @ model.components_.T
    if model.whiten:
        xp = xp / jnp.sqrt(model.explained_variance_)
    return xp


def ref_quan(v):
    v = v.astype(jnp.float32)
    s = jnp.sign(v)
    num = jnp.sum(v * s, axis=1)
    den = (jnp.maximum(jnp.linalg.norm(v, axis=1), 1e-8)
           * jnp.maximum(jnp.linalg.norm(s, axis=1), 1e-8))
    return jnp.mean(1.0 - num / den)


if __name__ == "__main__":
    key = jax.random.PRNGKey(0)
    N, D, nbit = 64, 32, 16
    x = jax.random.normal(key, (N, D), dtype=jnp.float32) * 2.0 + 0.5

    def rel_err(a, b):
        return float(jnp.max(jnp.abs(a.astype(jnp.float32) - b.astype(jnp.float32)))
                     / (jnp.max(jnp.abs(b.astype(jnp.float32))) + 1e-6))

    # --- variant 1: whiten=True, whiten_input=False, f32 compute ---
    m1 = PCALossPallas(nbit, whiten=True, whiten_input=False,
                       compute_dtype=jnp.float32)
    v1, q1 = m1.forward_train(x)
    jax.block_until_ready((v1, q1))
    out1 = m1.forward_eval(x)
    jax.block_until_ready(out1)
    ref1 = ref_eval(x, m1)
    assert rel_err(out1, ref1) < 1e-2, "eval transform mismatch (variant 1)"
    assert rel_err(out1, v1) < 1e-3, "train/eval transform mismatch (variant 1)"
    qr1 = float(ref_quan(v1))
    assert abs(float(q1) - qr1) < 1e-2, "quan error mismatch (variant 1)"
    assert 0.0 <= float(q1) <= 2.0, "quan error out of range (variant 1)"

    # --- variant 2: whiten=False, whiten_input=True (folded whiten+PCA), bf16 ---
    m2 = PCALossPallas(nbit, whiten=False, whiten_input=True,
                       compute_dtype=jnp.bfloat16)
    v2, q2 = m2.forward_train(x)
    jax.block_until_ready((v2, q2))
    out2 = m2.forward_eval(x)
    jax.block_until_ready(out2)
    ref2 = ref_eval(x, m2)
    assert rel_err(out2, ref2) < 8e-2, "eval transform mismatch (variant 2, bf16)"
    assert rel_err(out2, v2) < 1e-3, "train/eval transform mismatch (variant 2)"
    assert 0.0 <= float(q2) <= 2.0, "quan error out of range (variant 2)"

    print("KERNEL_OK")
</pallas_src>

<mosaic_0001>
module attributes {stable_mosaic.version = 11 : i64} {
  func.func @kernel(%arg0: i32, %arg1: i32, %arg2: memref<64x32xf32, #tpu.memory_space<vmem>>, %arg3: memref<32x128xf32, #tpu.memory_space<vmem>>, %arg4: memref<1x128xf32, #tpu.memory_space<vmem>>, %arg5: memref<64x128xf32, #tpu.memory_space<vmem>>, %arg6: memref<8x128xf32, #tpu.memory_space<vmem>>, %arg7: memref<64x128xf32, #tpu.memory_space<vmem>>) attributes {dimension_semantics = [#tpu.dimension_semantics<parallel>, #tpu.dimension_semantics<arbitrary>], iteration_bounds = array<i64: 1, 1>, scalar_prefetch = 0 : i64, scratch_operands = 1 : i64, tpu.core_type = #tpu.core_type<tc>, window_params = [{transform_indices = @transform_0, window_bounds = array<i64: 64, 32>}, {transform_indices = @transform_1, window_bounds = array<i64: 32, 128>}, {pipeline_mode = #tpu.pipeline_mode<synchronous>, transform_indices = @transform_2, window_bounds = array<i64: 1, 128>}, {transform_indices = @transform_3, window_bounds = array<i64: 64, 128>}, {transform_indices = @transform_4, window_bounds = array<i64: 8, 128>}]} {
    %c0_i32 = arith.constant 0 : i32
    %0 = arith.cmpi eq, %arg1, %c0_i32 : i32
    %1 = arith.extui %0 : i1 to i32
    %c0_i32_0 = arith.constant 0 : i32
    %2 = arith.cmpi ne, %1, %c0_i32_0 : i32
    scf.if %2 {
      %cst_10 = arith.constant 0.000000e+00 : f32
      %12 = vector.broadcast %cst_10 : f32 to vector<64x128xf32>
      %c0_11 = arith.constant 0 : index
      %c0_12 = arith.constant 0 : index
      %13 = vector.load %arg7[%c0_11, %c0_12] : memref<64x128xf32, #tpu.memory_space<vmem>>, vector<64x128xf32>
      tpu.vector_store %arg7[%c0_11, %c0_12], %12 {strides = array<i32>} : memref<64x128xf32, #tpu.memory_space<vmem>>, vector<64x128xf32>,
    } else {
    }
    %c0 = arith.constant 0 : index
    %c0_1 = arith.constant 0 : index
    %3 = vector.load %arg7[%c0, %c0_1] : memref<64x128xf32, #tpu.memory_space<vmem>>, vector<64x128xf32>
    %c0_2 = arith.constant 0 : index
    %c0_3 = arith.constant 0 : index
    %4 = vector.load %arg2[%c0_2, %c0_3] : memref<64x32xf32, #tpu.memory_space<vmem>>, vector<64x32xf32>
    %c0_4 = arith.constant 0 : index
    %c0_5 = arith.constant 0 : index
    %5 = vector.load %arg3[%c0_4, %c0_5] : memref<32x128xf32, #tpu.memory_space<vmem>>, vector<32x128xf32>
    %cst = arith.constant dense<0.000000e+00> : vector<64x128xf32>
    %6 = tpu.matmul %4, %5, %cst {dimension_numbers = #tpu.dot_dimension_numbers<[1], [0], [0], [1], [0, 0, 1, 1], [], []>} : vector<64x32xf32>, vector<32x128xf32>, vector<64x128xf32> -> vector<64x128xf32>
    %7 = arith.addf %3, %6 : vector<64x128xf32>
    %c0_6 = arith.constant 0 : index
    %c0_7 = arith.constant 0 : index
    %8 = vector.load %arg7[%c0_6, %c0_7] : memref<64x128xf32, #tpu.memory_space<vmem>>, vector<64x128xf32>
    tpu.vector_store %arg7[%c0_6, %c0_7], %7 {strides = array<i32>} : memref<64x128xf32, #tpu.memory_space<vmem>>, vector<64x128xf32>,
    %c0_i32_8 = arith.constant 0 : i32
    %9 = arith.cmpi eq, %arg1, %c0_i32_8 : i32
    %10 = arith.extui %9 : i1 to i32
    %c0_i32_9 = arith.constant 0 : i32
    %11 = arith.cmpi ne, %10, %c0_i32_9 : i32
    scf.if %11 {
      %c0_10 = arith.constant 0 : index
      %c0_11 = arith.constant 0 : index
      %12 = vector.load %arg7[%c0_10, %c0_11] : memref<64x128xf32, #tpu.memory_space<vmem>>, vector<64x128xf32>
      %c0_12 = arith.constant 0 : index
      %c0_13 = arith.constant 0 : index
      %13 = vector.load %arg4[%c0_12, %c0_13] : memref<1x128xf32, #tpu.memory_space<vmem>>, vector<1x128xf32>
      %14 = vector.broadcast %13 : vector<1x128xf32> to vector<64x128xf32>
      %15 = arith.addf %12, %14 : vector<64x128xf32>
      %c0_14 = arith.constant 0 : index
      %c0_15 = arith.constant 0 : index
      %16 = vector.load %arg5[%c0_14, %c0_15] : memref<64x128xf32, #tpu.memory_space<vmem>>, vector<64x128xf32>
      tpu.vector_store %arg5[%c0_14, %c0_15], %15 {strides = array<i32>} : memref<64x128xf32, #tpu.memory_space<vmem>>, vector<64x128xf32>,
      %17 = math.absf %15 : vector<64x128xf32>
      %cst_16 = arith.constant dense<0.000000e+00> : vector<64xf32>
      %18 = vector.multi_reduction <add>, %17, %cst_16 [1] : vector<64x128xf32> to vector<64xf32>
      %19 = vector.shape_cast %18 : vector<64xf32> to vector<64x1xf32>
      %20 = arith.mulf %15, %15 : vector<64x128xf32>
      %cst_17 = arith.constant dense<0.000000e+00> : vector<64xf32>
      %21 = vector.multi_reduction <add>, %20, %cst_17 [1] : vector<64x128xf32> to vector<64xf32>
      %22 = vector.shape_cast %21 : vector<64xf32> to vector<64x1xf32>
      %cst_18 = arith.constant 0.000000e+00 : f32
      %23 = vector.broadcast %cst_18 : f32 to vector<64x128xf32>
      %24 = arith.cmpf one, %15, %23 : vector<64x128xf32>
      %cst_19 = arith.constant 1.000000e+00 : f32
      %cst_20 = arith.constant 0.000000e+00 : f32
      %25 = vector.broadcast %cst_19 : f32 to vector<64x128xf32>
      %26 = vector.broadcast %cst_20 : f32 to vector<64x128xf32>
      %27 = arith.select %24, %25, %26 : vector<64x128xi1>, vector<64x128xf32>
      %cst_21 = arith.constant dense<0.000000e+00> : vector<64xf32>
      %28 = vector.multi_reduction <add>, %27, %cst_21 [1] : vector<64x128xf32> to vector<64xf32>
      %29 = vector.shape_cast %28 : vector<64xf32> to vector<64x1xf32>
      %cst_22 = arith.constant 1.000000e-16 : f32
      %30 = vector.broadcast %cst_22 : f32 to vector<64x1xf32>
      %31 = arith.maximumf %22, %30 : vector<64x1xf32>
      %32 = math.rsqrt %31 : vector<64x1xf32>
      %33 = arith.mulf %19, %32 : vector<64x1xf32>
      %cst_23 = arith.constant 1.000000e-16 : f32
      %34 = vector.broadcast %cst_23 : f32 to vector<64x1xf32>
      %35 = arith.maximumf %29, %34 : vector<64x1xf32>
      %36 = math.rsqrt %35 : vector<64x1xf32>
      %37 = arith.mulf %33, %36 : vector<64x1xf32>
      %c64_i32 = arith.constant 64 : i32
      %38 = arith.muli %arg0, %c64_i32 : i32
      %39 = tpu.iota {dimensions = array<i32: 0>} : vector<64x1xi32>
      %40 = vector.broadcast %38 : i32 to vector<64x1xi32>
      %41 = arith.addi %40, %39 : vector<64x1xi32>
      %c64_i32_24 = arith.constant 64 : i32
      %42 = vector.broadcast %c64_i32_24 : i32 to vector<64x1xi32>
      %43 = arith.cmpi slt, %41, %42 : vector<64x1xi32>
      %cst_25 = arith.constant 1.000000e+00 : f32
      %44 = vector.broadcast %cst_25 : f32 to vector<64x1xf32>
      %45 = arith.subf %44, %37 : vector<64x1xf32>
      %cst_26 = arith.constant 0.000000e+00 : f32
      %46 = vector.broadcast %cst_26 : f32 to vector<64x1xf32>
      %47 = arith.select %43, %45, %46 : vector<64x1xi1>, vector<64x1xf32>
      %48 = vector.shape_cast %47 : vector<64x1xf32> to vector<1x64x1xf32>
      %cst_27 = arith.constant dense<0.000000e+00> : vector<1xf32>
      %49 = vector.multi_reduction <add>, %48, %cst_27 [1, 2] : vector<1x64x1xf32> to vector<1xf32>
      %50 = vector.shape_cast %49 : vector<1xf32> to vector<1x1x1xf32>
      %51 = vector.extract %50[0, 0, 0] : f32 from vector<1x1x1xf32>
      %52 = tpu.iota {dimensions = array<i32: 0>} : vector<8x128xi32>
      %53 = tpu.iota {dimensions = array<i32: 1>} : vector<8x128xi32>
      %c0_i32_28 = arith.constant 0 : i32
      %54 = vector.broadcast %c0_i32_28 : i32 to vector<8x128xi32>
      %55 = arith.cmpi eq, %52, %54 : vector<8x128xi32>
      %c0_i32_29 = arith.constant 0 : i32
      %56 = vector.broadcast %c0_i32_29 : i32 to vector<8x128xi32>
      %57 = arith.cmpi eq, %53, %56 : vector<8x128xi32>
      %58 = arith.andi %55, %57 : vector<8x128xi1>
      %cst_30 = arith.constant 0.000000e+00 : f32
      %59 = vector.broadcast %51 : f32 to vector<8x128xf32>
      %60 = vector.broadcast %cst_30 : f32 to vector<8x128xf32>
      %61 = arith.select %58, %59, %60 : vector<8x128xi1>, vector<8x128xf32>
      %c0_31 = arith.constant 0 : index
      %c0_32 = arith.constant 0 : index
      %62 = vector.load %arg6[%c0_31, %c0_32] : memref<8x128xf32, #tpu.memory_space<vmem>>, vector<8x128xf32>
      tpu.vector_store %arg6[%c0_31, %c0_32], %61 {strides = array<i32>} : memref<8x128xf32, #tpu.memory_space<vmem>>, vector<8x128xf32>,
    } else {
    }
    return
  }
  func.func @transform_0(%arg0: i32, %arg1: i32) -> (i32, i32) {
    %c0_i32 = arith.constant 0 : i32
    return %arg0, %arg1 : i32, i32
  }
  func.func @transform_1(%arg0: i32, %arg1: i32) -> (i32, i32) {
    %c0_i32 = arith.constant 0 : i32
    %c0_i32_0 = arith.constant 0 : i32
    return %arg1, %c0_i32 : i32, i32
  }
  func.func @transform_2(%arg0: i32, %arg1: i32) -> (i32, i32) {
    %c0_i32 = arith.constant 0 : i32
    %c0_i32_0 = arith.constant 0 : i32
    %c0_i32_1 = arith.constant 0 : i32
    return %c0_i32, %c0_i32_0 : i32, i32
  }
  func.func @transform_3(%arg0: i32, %arg1: i32) -> (i32, i32) {
    %c0_i32 = arith.constant 0 : i32
    %c0_i32_0 = arith.constant 0 : i32
    return %arg0, %c0_i32 : i32, i32
  }
  func.func @transform_4(%arg0: i32, %arg1: i32) -> (i32, i32) {
    %c0_i32 = arith.constant 0 : i32
    %c0_i32_0 = arith.constant 0 : i32
    return %arg0, %c0_i32 : i32, i32
  }
}

</mosaic_0001>

<bundles_post_ra>
// kernel: tpu_custom_call.1
= control target key start
LH: loop header
LB: loop body
LE: loop exit
PB: predicated region body
PF: predicated region fallthrough
CT: control target
= control target key end

     0   :  { %10 = vsyncpa [#allocation4], 0  ;;  %vm50_vm0 = vcmask 261120   ;;  %s727_s0 = inlined_call_operand.vmem [shape: f32[64,32], index: 0, kind: input, shape index: {}]   ;;  %s728_s1 = inlined_call_operand.vmem [shape: f32[32,128], index: 1, kind: input, shape index: {}]   ;;  %s729_s2 = inlined_call_operand.vmem [shape: f32[1,128], index: 2, kind: input, shape index: {}]   ;;  %s730_s3 = inlined_call_operand.hbm [shape: f32[64,128], index: 3, kind: output, shape index: {0}]   ;;  %s731_s4 = inlined_call_operand.hbm [shape: f32[8,128], index: 4, kind: output, shape index: {1}]  }
   0x1   :  { %v46_v0 = vld [vmem:[%s728_s1] sm:$0xff]  ;;  %v47_v1 = vld [vmem:[%s728_s1 + $0x8] sm:$0xff]  ;;  %v48_v2 = vld [vmem:[%s728_s1 + $0x10] sm:$0xff] }
   0x2   :  { %v505_v3 = vpack.c.bf16 %v47_v1, %v46_v0  ;;  %v49_v4 = vld [vmem:[%s728_s1 + $0x18] sm:$0xff]  ;;  %v38_v5 = vld [vmem:[%s727_s0] sm:$0xff] }
   0x3   :  { %v42_v6 = vld [vmem:[%s727_s0 + $0x20] sm:$0xff]  ;;  %v509_v7 = vpack.c.bf16 %v49_v4, %v48_v2  ;;  %493 = vmatprep.mubr.msk.f32.mxu0 %vm50_vm0, %v38_v5 }
   0x4   :  { %499 = vmatprep.mubr.msk.f32.mxu1 %vm50_vm0, %v42_v6  ;;  %506 = vmatprep.subr.bf16.mxu0 %v505_v3 }
   0x5   :  { %513 = vmatprep.subr.bf16.mxu1 %v505_v3  ;;  %508 = vmatpush3.bf16.msra.mxu0 %v505_v3 }
   0x6   :  { %515 = vmatpush3.bf16.msra.mxu1 %v505_v3 }
   0x7   :  { %11 = vsyncpa [#allocation6], 0  ;;  %510 = vmatprep.subr.bf16.mxu0 %v509_v7  ;;  %514 = vmatprep.subr.bf16.mxu1 %v509_v7  ;;  %v39_v8 = vld [vmem:[%s727_s0 + $0x8] sm:$0xff]  ;;  %v40_v10 = vld [vmem:[%s727_s0 + $0x10] sm:$0xff]  ;;  %v604_v33 = vmov 0.0   ;;  %vm401_vm9 = vcmask 7168  }
   0x8   :  { %v43_v9 = vld [vmem:[%s727_s0 + $0x28] sm:$0xff]  ;;  %v44_v11 = vld [vmem:[%s727_s0 + $0x30] sm:$0xff]  ;;  %v41_v12 = vld [vmem:[%s727_s0 + $0x18] sm:$0xff] }
   0x9   :  { %512 = vmatpush3.bf16.msra.mxu0 %v509_v7  ;;  %v45_v13 = vld [vmem:[%s727_s0 + $0x38] sm:$0xff]  ;;  %v472_v14 = vld [vmem:[%s729_s2] ss:$0 sm:$0xff]  ;;  %s605_s0 = smov [#allocation3]  }
   0xa   :  { %516 = vmatpush3.bf16.msra.mxu1 %v509_v7  ;;  %s439_s2 = sshll.u32 %s605_s0, 4  ;;  %s440_s2 = int_to_ptr.vmem [resolvable:$true] %s439_s2 }
   0xb   :  { %s556_s14 = scalar_lea.vmem %s440_s2, 1024  ;;  %p561_p1 = scmp.lt.s32.totalorder %s440_s2, %s440_s2 }
   0xc   :  { %494 = vmatmul.mubr.msk.f32.vlgmr.msra.gmra.mrb[0].mxu0 %vm50_vm0, %v39_v8  ;;  %p557_p0 = scmp.ne.s32.totalorder %s440_s2, %s556_s14  ;;  %p562_p2 = scmp.lt.s32.totalorder %s556_s14, %s556_s14 }
   0xd   :  { %500 = vmatmul.mubr.msk.f32.vlgmr.msra.gmra.mrb[0].mxu1 %vm50_vm0, %v43_v9  ;;  %496 = vmatprep.mubr.msk.f32.mxu0 %vm50_vm0, %v40_v10 }
   0xe   :  { %502 = vmatprep.mubr.msk.f32.mxu1 %vm50_vm0, %v44_v11  ;;  %p563_p3 = por %p562_p2, %p561_p1 }
  0x10   :  { %497 = vmatmul.mubr.msk.f32.gmra.mrb[2].mxu0 %vm50_vm0, %v41_v12  ;;  %p564_p4 = pnand %p563_p3, %p557_p0 }
  0x11   :  { %503 = vmatmul.mubr.msk.f32.gmra.mrb[2].mxu1 %vm50_vm0, %v45_v13 }
  0xdf   :  { %v495_v15 = vpop.f32.mrb[0].mxu0 }
  0xe0   :  { %v501_v16 = vpop.f32.mrb[0].mxu1  ;;  %v215_v17 = vadd.f32 %v495_v15, %v472_v14  ;;  %v141_v19 = vpop.f32.mrb[1].mxu0 }
  0xe1   :  { %v681_v18 = vadd.f32 %v501_v16, %v472_v14  ;;  %v161_v20 = vpop.f32.mrb[1].mxu1  ;;  %v214_v21 = vadd.f32 %v472_v14, %v141_v19 }
  0xe2   :  { %v683_v22 = vadd.f32 %v472_v14, %v161_v20  ;;  %223 = vst [vmem:[#allocation3 + $0x8] sm:$0xff] %v215_v17  ;;  %v255_v24 = vmul.f32 %v215_v17, %v215_v17  ;;  %vm279_vm1 = vcmp.ne.f32.partialorder %v215_v17, 0.0  ;;  %v231_v46 = vand.u32 2147483647, %v215_v17 }
  0xe3   :  { %227 = vst [vmem:[#allocation3 + $0x28] sm:$0xff] %v681_v18  ;;  %v259_v23 = vmul.f32 %v681_v18, %v681_v18  ;;  %222 = vst [vmem:[#allocation3] sm:$0xff] %v214_v21  ;;  %v498_v25 = vpop.f32.mrb[2].mxu0  ;;  %vm278_vm2 = vcmp.ne.f32.partialorder %v214_v21, 0.0  ;;  %v287_v34 = vsel %vm279_vm1, 1.0, %v604_v33  ;;  %vm283_vm3 = vcmp.ne.f32.partialorder %v681_v18, 0.0 }
  0xe4   :  { %226 = vst [vmem:[#allocation3 + $0x20] sm:$0xff] %v683_v22  ;;  %v504_v26 = vpop.f32.mrb[2].mxu1  ;;  %264 = vadd.xlane.f32.xlu0 %v255_v24  ;;  %v217_v27 = vadd.f32 %v498_v25, %v472_v14  ;;  %v151_v28 = vpop.f32.mrb[3].mxu0  ;;  %v286_v35 = vsel %vm278_vm2, 1.0, %v604_v33  ;;  %v258_v36 = vmul.f32 %v683_v22, %v683_v22  ;;  %v291_v37 = vsel %vm283_vm3, 1.0, %v604_v33 }
  0xe5   :  { %272 = vadd.xlane.f32.xlu1 %v259_v23  ;;  %v221_v29 = vadd.f32 %v504_v26, %v472_v14  ;;  %v171_v30 = vpop.f32.mrb[3].mxu1  ;;  %v216_v31 = vadd.f32 %v472_v14, %v151_v28  ;;  %v254_v39 = vmul.f32 %v214_v21, %v214_v21  ;;  %vm282_vm4 = vcmp.ne.f32.partialorder %v683_v22, 0.0 }
  0xe6   :  { %v220_v32 = vadd.f32 %v472_v14, %v171_v30  ;;  %225 = vst [vmem:[#allocation3 + $0x18] sm:$0xff] %v217_v27  ;;  %v257_v38 = vmul.f32 %v217_v27, %v217_v27  ;;  %v290_v41 = vsel %vm282_vm4, 1.0, %v604_v33  ;;  %vm281_vm5 = vcmp.ne.f32.partialorder %v217_v27, 0.0 }
  0xe7   :  { %229 = vst [vmem:[#allocation3 + $0x38] sm:$0xff] %v221_v29  ;;  %224 = vst [vmem:[#allocation3 + $0x10] sm:$0xff] %v216_v31  ;;  %v261_v40 = vmul.f32 %v221_v29, %v221_v29  ;;  %v256_v42 = vmul.f32 %v216_v31, %v216_v31  ;;  %v289_v43 = vsel %vm281_vm5, 1.0, %v604_v33  ;;  %vm280_vm6 = vcmp.ne.f32.partialorder %v216_v31, 0.0 }
  0xe8   :  { %228 = vst [vmem:[#allocation3 + $0x30] sm:$0xff] %v220_v32  ;;  %296 = vadd.xlane.f32.xlu0 %v287_v34  ;;  %v230_v44 = vand.u32 2147483647, %v214_v21  ;;  %v288_v45 = vsel %vm280_vm6, 1.0, %v604_v33  ;;  %v260_v47 = vmul.f32 %v220_v32, %v220_v32  ;;  %vm284_vm7 = vcmp.ne.f32.partialorder %v220_v32, 0.0 }
  0xe9   :  { %294 = vadd.xlane.f32.xlu1 %v286_v35  ;;  %vm285_vm8 = vcmp.ne.f32.partialorder %v221_v29, 0.0  ;;  %v292_v48 = vsel %vm284_vm7, 1.0, %v604_v33  ;;  %v233_v50 = vand.u32 2147483647, %v217_v27  ;;  %v232_v51 = vand.u32 2147483647, %v216_v31 }
  0xea   :  { %v293_v49 = vsel %vm285_vm8, 1.0, %v604_v33  ;;  %v235_v52 = vand.u32 2147483647, %v681_v18  ;;  %v234_v53 = vand.u32 2147483647, %v683_v22 }
  0xeb   :  { %v237_v54 = vand.u32 2147483647, %v221_v29  ;;  %v236_v55 = vand.u32 2147483647, %v220_v32 }
  0xec   :  { %304 = vadd.xlane.f32.xlu0 %v291_v37 }
  0xed   :  { %270 = vadd.xlane.f32.xlu1 %v258_v36 }
  0xf0   :  { %262 = vadd.xlane.f32.xlu0 %v254_v39 }
  0xf1   :  { %268 = vadd.xlane.f32.xlu1 %v257_v38 }
  0xf4   :  { %302 = vadd.xlane.f32.xlu0 %v290_v41 }
  0xf5   :  { %276 = vadd.xlane.f32.xlu1 %v261_v40 }
  0xf8   :  { %300 = vadd.xlane.f32.xlu0 %v289_v43 }
  0xf9   :  { %266 = vadd.xlane.f32.xlu1 %v256_v42 }
  0xfc   :  { %298 = vadd.xlane.f32.xlu0 %v288_v45 }
  0xfd   :  { %238 = vadd.xlane.f32.xlu1 %v230_v44 }
 0x100   :  { %240 = vadd.xlane.f32.xlu0 %v231_v46 }
 0x101   :  { %274 = vadd.xlane.f32.xlu1 %v260_v47 }
 0x104   :  { %306 = vadd.xlane.f32.xlu0 %v292_v48 }
 0x105   :  { %308 = vadd.xlane.f32.xlu1 %v293_v49 }
 0x108   :  { %242 = vadd.xlane.f32.xlu0 %v232_v51 }
 0x109   :  { %244 = vadd.xlane.f32.xlu1 %v233_v50 }
 0x10c   :  { %246 = vadd.xlane.f32.xlu0 %v234_v53 }
 0x10d   :  { %248 = vadd.xlane.f32.xlu1 %v235_v52 }
 0x110   :  { %250 = vadd.xlane.f32.xlu0 %v236_v55 }
 0x111   :  { %252 = vadd.xlane.f32.xlu1 %v237_v54 }
 0x171   :  { %v265_v57 = vpop.xlane.xlu0 %264 }
 0x172   :  { %v273_v56 = vpop.xlane.xlu1 %272  ;;  %v311_v1 = vmax.f32 %v265_v57, 1e-16 }
 0x173   :  { %v315_v14 = vmax.f32 %v273_v56, 1e-16 }
 0x175   :  { %v297_v58 = vpop.xlane.xlu0 %296 }
 0x176   :  { %v295_v59 = vpop.xlane.xlu1 %294  ;;  %v335_v2 = vmax.f32 %v297_v58, 1e-16 }
 0x177   :  { %v334_v5 = vmax.f32 %v295_v59, 1e-16 }
 0x179   :  { %v305_v60 = vpop.xlane.xlu0 %304 }
 0x17a   :  { %v271_v61 = vpop.xlane.xlu1 %270  ;;  %v339_v17 = vmax.f32 %v305_v60, 1e-16 }
 0x17b   :  { %v314_v16 = vmax.f32 %v271_v61, 1e-16 }
 0x17d   :  { %v263_v62 = vpop.xlane.xlu0 %262 }
 0x17e   :  { %v269_v63 = vpop.xlane.xlu1 %268  ;;  %v310_v0 = vmax.f32 %v263_v62, 1e-16 }
 0x17f   :  { %v313_v8 = vmax.f32 %v269_v63, 1e-16 }
 0x180   :  { %524 = vrsqrt.f32 %v310_v0 }
 0x181   :  { %v303_v3 = vpop.xlane.xlu0 %302  ;;  %526 = vrsqrt.f32 %v311_v1 }
 0x182   :  { %v277_v4 = vpop.xlane.xlu1 %276  ;;  %528 = vrsqrt.f32 %v335_v2  ;;  %v338_v19 = vmax.f32 %v303_v3, 1e-16 }
 0x183   :  { %530 = vrsqrt.f32 %v334_v5  ;;  %v317_v23 = vmax.f32 %v277_v4, 1e-16 }
 0x184   :  { %532 = vrsqrt.f32 %v313_v8 }
 0x185   :  { %v301_v6 = vpop.xlane.xlu0 %300 }
 0x186   :  { %v267_v7 = vpop.xlane.xlu1 %266  ;;  %v337_v10 = vmax.f32 %v301_v6, 1e-16 }
 0x187   :  { %v312_v9 = vmax.f32 %v267_v7, 1e-16 }
 0x189   :  { %v299_v11 = vpop.xlane.xlu0 %298  ;;  %534 = vrsqrt.f32 %v312_v9 }
 0x18a   :  { %v239_v12 = vpop.xlane.xlu1 %238  ;;  %v525_v13 = vpop.eup %524  ;;  %v336_v15 = vmax.f32 %v299_v11, 1e-16 }
 0x18b   :  { %v527_v18 = vpop.eup %526  ;;  %v326_v20 = vmul.f32 %v525_v13, %v239_v12 }
 0x18c   :  { %536 = vrsqrt.f32 %v336_v15  ;;  %v529_v25 = vpop.eup %528 }
 0x18d   :  { %538 = vrsqrt.f32 %v337_v10  ;;  %v241_v21 = vpop.xlane.xlu0 %240  ;;  %v531_v27 = vpop.eup %530 }
 0x18e   :  { %v275_v22 = vpop.xlane.xlu1 %274  ;;  %540 = vrsqrt.f32 %v315_v14  ;;  %v327_v24 = vmul.f32 %v527_v18, %v241_v21  ;;  %v350_v29 = vmul.f32 %v531_v27, %v326_v20  ;;  %v533_v34 = vpop.eup %532 }
 0x18f   :  { %542 = vrsqrt.f32 %v314_v16  ;;  %v316_v26 = vmax.f32 %v275_v22, 1e-16 }
 0x190   :  { %544 = vrsqrt.f32 %v339_v17  ;;  %v351_v28 = vmul.f32 %v529_v25, %v327_v24  ;;  %v385_v37 = vsub.f32 1.0, %v350_v29 }
 0x191   :  { %546 = vrsqrt.f32 %v338_v19  ;;  %v307_v30 = vpop.xlane.xlu0 %306 }
 0x192   :  { %v309_v31 = vpop.xlane.xlu1 %308  ;;  %548 = vrsqrt.f32 %v317_v23  ;;  %v340_v32 = vmax.f32 %v307_v30, 1e-16  ;;  %v386_v35 = vsub.f32 1.0, %v351_v28  ;;  %v402_v49 = vsel %vm401_vm9, %v385_v37, 0.0 }
 0x193   :  { %v341_v33 = vmax.f32 %v309_v31, 1e-16  ;;  %550 = vrsqrt.f32 %v316_v26  ;;  %v535_v36 = vpop.eup %534 }
 0x194   :  { %552 = vrsqrt.f32 %v340_v32  ;;  %v403_v45 = vsel %vm401_vm9, %v386_v35, 0.0 }
 0x195   :  { %554 = vrsqrt.f32 %v341_v33  ;;  %v243_v39 = vpop.xlane.xlu0 %242  ;;  %v404_v58 = vadd.f32 %v403_v45, %v402_v49 }
 0x196   :  { %v245_v38 = vpop.xlane.xlu1 %244  ;;  %v537_v40 = vpop.eup %536  ;;  %v328_v42 = vmul.f32 %v535_v36, %v243_v39 }
 0x197   :  { %v329_v41 = vmul.f32 %v533_v34, %v245_v38  ;;  %v539_v43 = vpop.eup %538 }
 0x198   :  { %v541_v44 = vpop.eup %540  ;;  %v352_v47 = vmul.f32 %v537_v40, %v328_v42 }
 0x199   :  { %v353_v46 = vmul.f32 %v539_v43, %v329_v41  ;;  %v543_v48 = vpop.eup %542  ;;  %v247_v51 = vpop.xlane.xlu0 %246 }
 0x19a   :  { %v249_v50 = vpop.xlane.xlu1 %248  ;;  %v545_v52 = vpop.eup %544  ;;  %v387_v54 = vsub.f32 1.0, %v352_v47  ;;  %v330_v56 = vmul.f32 %v543_v48, %v247_v51 }
 0x19b   :  { %v388_v53 = vsub.f32 1.0, %v353_v46  ;;  %v331_v55 = vmul.f32 %v541_v44, %v249_v50  ;;  %v547_v57 = vpop.eup %546 }
 0x19c   :  { %v549_v59 = vpop.eup %548  ;;  %v405_v60 = vsel %vm401_vm9, %v387_v54, 0.0  ;;  %v354_v62 = vmul.f32 %v547_v57, %v330_v56 }
 0x19d   :  { %v355_v61 = vmul.f32 %v545_v52, %v331_v55  ;;  %v551_v63 = vpop.eup %550  ;;  %v407_v0 = vsel %vm401_vm9, %v388_v53, 0.0  ;;  %v406_v1 = vadd.f32 %v405_v60, %v404_v58  ;;  %v251_v3 = vpop.xlane.xlu0 %250 }
 0x19e   :  { %v253_v2 = vpop.xlane.xlu1 %252  ;;  %v553_v4 = vpop.eup %552  ;;  %v389_v6 = vsub.f32 1.0, %v354_v62  ;;  %v332_v8 = vmul.f32 %v551_v63, %v251_v3 }
 0x19f   :  { %v390_v5 = vsub.f32 1.0, %v355_v61  ;;  %v333_v7 = vmul.f32 %v549_v59, %v253_v2  ;;  %v555_v9 = vpop.eup %554  ;;  %v408_v10 = vadd.f32 %v407_v0, %v406_v1 }
 0x1a0   :  { %v409_v11 = vsel %vm401_vm9, %v389_v6, 0.0  ;;  %v356_v13 = vmul.f32 %v553_v4, %v332_v8 }
 0x1a1   :  { %v357_v12 = vmul.f32 %v555_v9, %v333_v7  ;;  %v410_v14 = vadd.f32 %v409_v11, %v408_v10  ;;  %v411_v15 = vsel %vm401_vm9, %v390_v5, 0.0 }
 0x1a2   :  { %v391_v17 = vsub.f32 1.0, %v356_v13 }
 0x1a3   :  { %v392_v16 = vsub.f32 1.0, %v357_v12  ;;  %v412_v18 = vadd.f32 %v411_v15, %v410_v14 }
 0x1a4   :  { %v413_v19 = vsel %vm401_vm9, %v391_v17, 0.0 }
 0x1a5   :  { %v414_v20 = vadd.f32 %v413_v19, %v412_v18  ;;  %v415_v21 = vsel %vm401_vm9, %v392_v16, 0.0 }
 0x1a7   :  { %v416_v22 = vadd.f32 %v415_v21, %v414_v20 }
 0x1a9   :  { %417 = vadd.xlane.f32.xlu0 %v416_v22 }
 0x1aa   :  { %567 = shalt.err (!%p564_p4)
}
 0x1ab   :  { %s568_s17 = scalar_lea.hbm %s730_s3, 1024 }
 0x1ac   :  { %p569_p5 = scmp.ne.s32.totalorder %s730_s3, %s568_s17  ;;  %p572_p6 = scmp.lt.u32.totalorder %s568_s17, %s730_s3 }
 0x1ae   :  { %p574_p7 = pnand %p572_p6, %p569_p5 }
 0x1b0   :  { %577 = shalt.err (!%p574_p7)
}
 0x1b1   :  { %s606_s22 = smov 128   ;;  %s607_s23 = smov 8   ;;  %v359_v30 = vlaneseq }
 0x1b2   :  { %445 = dma.vmem_to_hbm [thread:$0]  %s440_s2, 1024, %s730_s3, [#allocation4], %s606_s22, %s606_s22, %s607_s23  }
 0x1b3   :  { %v360_v31 = vshrl.u32 %v359_v30, 7  ;;  %v427_v32 = vand.u32 127, %v359_v30  ;;  %s608_s26 = smov [#allocation5]  }
 0x1b4   :  { %s452_s1 = sshll.u32 %s608_s26, 4  ;;  %s453_s1 = int_to_ptr.vmem [resolvable:$true] %s452_s1 }
 0x1b5   :  { %vm428_vm10 = vcmp.eq.s32.totalorder %v360_v31, 0  ;;  %vm429_vm11 = vcmp.eq.s32.totalorder %v427_v32, 0  ;;  %s578_s3 = scalar_lea.vmem %s453_s1, 128  ;;  %p583_p9 = scmp.lt.s32.totalorder %s453_s1, %s453_s1 }
 0x1b6   :  { %vm430_vm12 = vmand %vm428_vm10, %vm429_vm11  ;;  %p579_p8 = scmp.ne.s32.totalorder %s453_s1, %s578_s3  ;;  %p584_p10 = scmp.lt.s32.totalorder %s578_s3, %s578_s3 }
 0x1b8   :  { %p585_p11 = por %p584_p10, %p583_p9 }
 0x1ba   :  { %p586_p12 = pnand %p585_p11, %p579_p8 }
 0x236   :  { %v418_v23 = vpop.xlane.xlu0 %417 }
 0x237   :  { %v419_v24 = vrot.slane %v418_v23, 4 }
 0x239   :  { %v420_v25 = vadd.f32 %v419_v24, %v418_v23 }
 0x23b   :  { %v421_v26 = vrot.slane %v420_v25, 2 }
 0x23d   :  { %v422_v27 = vadd.f32 %v421_v26, %v420_v25 }
 0x23f   :  { %v423_v28 = vrot.slane %v422_v27, 1 }
 0x241   :  { %v424_v29 = vadd.f32 %v423_v28, %v422_v27 }
 0x243   :  { %517 = vpush %v424_v29 }
 0x274   :  { %s518_s27 = spop %517 }
 0x275   :  { %v431_v33 = vstv %s518_s27 }
 0x276   :  { %v432_v34 = vsel %vm430_vm12, %v431_v33, 0.0 }
 0x277   :  { %433 = vst [vmem:[#allocation5] sm:$0xff] %v432_v34 }
 0x278   :  { %589 = shalt.err (!%p586_p12)
}
 0x279   :  { %s590_s30 = scalar_lea.hbm %s731_s4, 128 }
 0x27a   :  { %p591_p13 = scmp.ne.s32.totalorder %s731_s4, %s590_s30  ;;  %p594_p0 = scmp.lt.u32.totalorder %s590_s30, %s731_s4 }
 0x27c   :  { %p596_p1 = pnand %p594_p0, %p591_p13 }
 0x27e   :  { %599 = shalt.err (!%p596_p1)
}
 0x27f   :  { %455 = dma.vmem_to_hbm [thread:$0]  %s453_s1, 128, %s731_s4, [#allocation6]  }
 0x280   :  { %600 = dma.done.wait [#allocation4], 1024  }
 0x281   :  { %601 = vsyncadd [#allocation4], 4294966272 }
 0x282   :  { %602 = dma.done.wait [#allocation6], 128  }
 0x283   :  { %603 = vsyncadd [#allocation6], 4294967168 }
 0x284   :  { %462 = vsyncpa [#allocation4], 1 }
 0x285   :  { %463 = vsyncpa [#allocation6], 1 }

</bundles_post_ra>
